<compile_context>
chip_gen: v6e
topology: v6e:2x2x1
jax: 0.10.0
libtpu: 0.0.40
codegen_flags: <defaults>
</compile_context>

<pallas_src>
import functools

import jax
import jax.numpy as jnp
from jax.experimental import pallas as pl
from jax.experimental.pallas import tpu as pltpu

INPUT_SIZE = 28
HIDDEN = 64
NUM_CLASSES = 10

OUT_P = 128     # classes padded to a lane-dense output store
SUBLANE = 8     # f32 sublane granularity


def _lstm_recurrence_kernel(gates_ref, w_hh_ref, w_out_ref, b_out_ref, out_ref,
                            *, seq_len, hidden):
    """Serial LSTM recurrence + linear head for one batch tile.

    gates_ref: (S, tileB, 4*hidden) bf16  precomputed x@W_ih + b, gate cols [i|f|2g|o]
    w_hh_ref:  (hidden, 4*hidden)   bf16  recurrent weight, g columns pre-scaled by 2
    w_out_ref: (hidden, OUT_P)      bf16  zero-padded classifier weight (transposed)
    b_out_ref: (1, OUT_P)           f32
    out_ref:   (tileB, OUT_P)       f32
    """
    tb = gates_ref.shape[1]
    w_hh = w_hh_ref[...]            # load recurrent weight to vregs once (hoisted)

    def step(t, carry):
        h, c = carry
        # one bf16 MXU dot per step, f32 accumulate; bf16 gate stream re-promoted here
        z = gates_ref[t].astype(jnp.float32) + jnp.dot(
            h.astype(jnp.bfloat16), w_hh, preferred_element_type=jnp.float32)
        s = jax.nn.sigmoid(z)                       # single EUP pass over 256 lanes
        i = s[:, 0 * hidden:1 * hidden]
        f = s[:, 1 * hidden:2 * hidden]
        g = 2.0 * s[:, 2 * hidden:3 * hidden] - 1.0  # tanh(x) = 2*sigmoid(2x) - 1
        o = s[:, 3 * hidden:4 * hidden]
        c_new = f * c + i * g
        h_new = o * jnp.tanh(c_new)
        return h_new, c_new

    h0 = jnp.zeros((tb, hidden), jnp.float32)
    c0 = jnp.zeros((tb, hidden), jnp.float32)
    # short sequences: full unroll; long sequences: bounded unroll to avoid spills
    unroll = True if seq_len <= 16 else 4
    h, _ = jax.lax.fori_loop(0, seq_len, step, (h0, c0), unroll=unroll)

    # classifier head: bf16 MXU operands, f32 accumulate, lane-dense store
    out_ref[...] = (
        jnp.dot(h.astype(jnp.bfloat16), w_out_ref[...],
                preferred_element_type=jnp.float32)
        + b_out_ref[...]
    )


def _scale_cell_gate(w):
    """Scale the g (cell) gate columns by 2 so tanh can be done as 2*sigmoid(2x)-1.

    w: (..., 4*HIDDEN) with PyTorch gate order [i | f | g | o] along the last axis.
    """
    return w.at[..., 2 * HIDDEN:3 * HIDDEN].multiply(2.0)


@jax.jit
def rnn_forward(x_bsi, params):
    """x_bsi: (batch, seq, INPUT_SIZE) float32 (batch_first, like the PyTorch module)."""
    w_ih, w_hh, b_ih, b_hh, w_out, b_out = params
    B, S, _ = x_bsi.shape

    # ---- parameter packing (one-time, outside the serial recurrence) ----
    w_ih_p = _scale_cell_gate(w_ih.T.astype(jnp.float32))                    # (28, 256)
    w_hh_p = _scale_cell_gate(w_hh.T.astype(jnp.float32)).astype(jnp.bfloat16)  # (64, 256)
    b_p = _scale_cell_gate((b_ih + b_hh).astype(jnp.float32))                # (256,)
    w_out_p = jnp.zeros((HIDDEN, OUT_P), jnp.float32).at[:, :NUM_CLASSES].set(
        w_out.T.astype(jnp.float32)).astype(jnp.bfloat16)
    b_out_p = jnp.zeros((1, OUT_P), jnp.float32).at[0, :NUM_CLASSES].set(
        b_out.astype(jnp.float32))

    # ---- input projection as one XLA GEMM in the wrapper (off the serial path) ----
    gates = jnp.dot(
        x_bsi.reshape(B * S, INPUT_SIZE).astype(jnp.bfloat16),
        w_ih_p.astype(jnp.bfloat16),
        preferred_element_type=jnp.float32) + b_p[None, :]
    gates = gates.reshape(B, S, 4 * HIDDEN).transpose(1, 0, 2)   # seq-major (S, B, 4H)

    # ---- batch tiling: tileB rows per grid step (parallel across TensorCores) ----
    B8 = ((B + SUBLANE - 1) // SUBLANE) * SUBLANE
    tile_b = min(128, B8)
    n_tiles = (B8 + tile_b - 1) // tile_b
    B_pad = n_tiles * tile_b
    if B_pad != B:
        gates = jnp.concatenate(
            [gates, jnp.zeros((S, B_pad - B, 4 * HIDDEN), jnp.float32)], axis=1)
    gates = gates.astype(jnp.bfloat16)                           # bf16 gate stream

    kernel = functools.partial(_lstm_recurrence_kernel, seq_len=S, hidden=HIDDEN)

    out_p = pl.pallas_call(
        kernel,
        out_shape=jax.ShapeDtypeStruct((B_pad, OUT_P), jnp.float32),
        grid_spec=pltpu.PrefetchScalarGridSpec(
            num_scalar_prefetch=0,
            grid=(n_tiles,),
            in_specs=[
                pl.BlockSpec((S, tile_b, 4 * HIDDEN), lambda i: (0, i, 0)),  # gates
                pl.BlockSpec((HIDDEN, 4 * HIDDEN), lambda i: (0, 0)),        # w_hh
                pl.BlockSpec((HIDDEN, OUT_P), lambda i: (0, 0)),             # w_out
                pl.BlockSpec((1, OUT_P), lambda i: (0, 0)),                  # b_out
            ],
            out_specs=pl.BlockSpec((tile_b, OUT_P), lambda i: (i, 0)),
        ),
        compiler_params=pltpu.CompilerParams(
            dimension_semantics=("parallel",),
            vmem_limit_bytes=32 * 1024 * 1024,
        ),
    )(gates, w_hh_p, w_out_p, b_out_p)

    return out_p[:B, :NUM_CLASSES]


def init_params(key):
    """Deterministic synthetic parameters matching PyTorch LSTM/Linear shapes."""
    k = jax.random.split(key, 6)
    scale = 1.0 / jnp.sqrt(jnp.float32(HIDDEN))
    w_ih = jax.random.uniform(k[0], (4 * HIDDEN, INPUT_SIZE), jnp.float32, -scale, scale)
    w_hh = jax.random.uniform(k[1], (4 * HIDDEN, HIDDEN), jnp.float32, -scale, scale)
    b_ih = jax.random.uniform(k[2], (4 * HIDDEN,), jnp.float32, -scale, scale)
    b_hh = jax.random.uniform(k[3], (4 * HIDDEN,), jnp.float32, -scale, scale)
    w_out = jax.random.uniform(k[4], (NUM_CLASSES, HIDDEN), jnp.float32, -scale, scale)
    b_out = jax.random.uniform(k[5], (NUM_CLASSES,), jnp.float32, -scale, scale)
    return (w_ih, w_hh, b_ih, b_hh, w_out, b_out)


def rnn_forward_ref(x_bsi, params):
    """Pure-JAX f32 reference of the PyTorch forward (for correctness check)."""
    w_ih, w_hh, b_ih, b_hh, w_out, b_out = params
    B, S, _ = x_bsi.shape
    h = jnp.zeros((B, HIDDEN), jnp.float32)
    c = jnp.zeros((B, HIDDEN), jnp.float32)
    for t in range(S):
        gates = x_bsi[:, t, :] @ w_ih.T + h @ w_hh.T + b_ih + b_hh
        i = jax.nn.sigmoid(gates[:, 0 * HIDDEN:1 * HIDDEN])
        f = jax.nn.sigmoid(gates[:, 1 * HIDDEN:2 * HIDDEN])
        g = jnp.tanh(gates[:, 2 * HIDDEN:3 * HIDDEN])
        o = jax.nn.sigmoid(gates[:, 3 * HIDDEN:4 * HIDDEN])
        c = f * c + i * g
        h = o * jnp.tanh(c)
    return h @ w_out.T + b_out


if __name__ == "__main__":
    key = jax.random.PRNGKey(0)
    k_x, k_p = jax.random.split(key)

    batch, seq = 2, 8
    x = jax.random.normal(k_x, (batch, seq, INPUT_SIZE), jnp.float32)
    params = init_params(k_p)

    out = jax.block_until_ready(rnn_forward(x, params))
    ref = rnn_forward_ref(x, params)

    assert out.shape == (batch, NUM_CLASSES)
    # bf16 matmul operands / bf16 gate stream (f32 state & accumulation) -> loose tolerance.
    assert jnp.allclose(out, ref, rtol=1e-2, atol=1e-2), "kernel mismatch vs reference"

    print("KERNEL_OK")
</pallas_src>

<mosaic_0001>
module attributes {stable_mosaic.version = 11 : i64} {
  func.func @_lstm_recurrence_kernel(%arg0: i32, %arg1: memref<8x8x256xbf16, #tpu.memory_space<vmem>>, %arg2: memref<64x256xbf16, #tpu.memory_space<vmem>>, %arg3: memref<64x128xbf16, #tpu.memory_space<vmem>>, %arg4: memref<1x128xf32, #tpu.memory_space<vmem>>, %arg5: memref<8x128xf32, #tpu.memory_space<vmem>>) attributes {dimension_semantics = [#tpu.dimension_semantics<parallel>], iteration_bounds = array<i64: 1>, scalar_prefetch = 0 : i64, scratch_operands = 0 : i64, tpu.core_type = #tpu.core_type<tc>, window_params = [{transform_indices = @transform_0, window_bounds = array<i64: 8, 8, 256>}, {pipeline_mode = #tpu.pipeline_mode<synchronous>, transform_indices = @transform_1, window_bounds = array<i64: 64, 256>}, {pipeline_mode = #tpu.pipeline_mode<synchronous>, transform_indices = @transform_2, window_bounds = array<i64: 64, 128>}, {pipeline_mode = #tpu.pipeline_mode<synchronous>, transform_indices = @transform_3, window_bounds = array<i64: 1, 128>}, {transform_indices = @transform_4, window_bounds = array<i64: 8, 128>}]} {
    %c0 = arith.constant 0 : index
    %c0_0 = arith.constant 0 : index
    %0 = vector.load %arg2[%c0, %c0_0] : memref<64x256xbf16, #tpu.memory_space<vmem>>, vector<64x256xbf16>
    %cst = arith.constant 0.000000e+00 : f32
    %1 = vector.broadcast %cst : f32 to vector<8x64xf32>
    %cst_1 = arith.constant 0.000000e+00 : f32
    %2 = vector.broadcast %cst_1 : f32 to vector<8x64xf32>
    %c0_i32 = arith.constant 0 : i32
    %3 = arith.index_cast %c0_i32 : i32 to index
    %c0_2 = arith.constant 0 : index
    %c0_3 = arith.constant 0 : index
    %4 = vector.load %arg1[%3, %c0_2, %c0_3] : memref<8x8x256xbf16, #tpu.memory_space<vmem>>, vector<1x8x256xbf16>
    %5 = vector.shape_cast %4 : vector<1x8x256xbf16> to vector<8x256xbf16>
    %6 = arith.extf %5 : vector<8x256xbf16> to vector<8x256xf32>
    %7 = arith.truncf %1 : vector<8x64xf32> to vector<8x64xbf16>
    %cst_4 = arith.constant dense<0.000000e+00> : vector<8x256xf32>
    %8 = tpu.matmul %7, %0, %cst_4 {dimension_numbers = #tpu.dot_dimension_numbers<[1], [0], [0], [1], [0, 0, 1, 1], [], []>} : vector<8x64xbf16>, vector<64x256xbf16>, vector<8x256xf32> -> vector<8x256xf32>
    %9 = arith.addf %6, %8 : vector<8x256xf32>
    %10 = arith.negf %9 : vector<8x256xf32>
    %11 = math.exp %10 : vector<8x256xf32>
    %cst_5 = arith.constant 1.000000e+00 : f32
    %12 = vector.broadcast %cst_5 : f32 to vector<8x256xf32>
    %13 = arith.addf %12, %11 : vector<8x256xf32>
    %14 = arith.divf %12, %13 : vector<8x256xf32>
    %15 = vector.extract_strided_slice %14 {offsets = [0, 0], sizes = [8, 64], strides = [1, 1]} : vector<8x256xf32> to vector<8x64xf32>
    %16 = vector.extract_strided_slice %14 {offsets = [0, 64], sizes = [8, 64], strides = [1, 1]} : vector<8x256xf32> to vector<8x64xf32>
    %17 = vector.extract_strided_slice %14 {offsets = [0, 128], sizes = [8, 64], strides = [1, 1]} : vector<8x256xf32> to vector<8x64xf32>
    %cst_6 = arith.constant 2.000000e+00 : f32
    %18 = vector.broadcast %cst_6 : f32 to vector<8x64xf32>
    %19 = arith.mulf %18, %17 : vector<8x64xf32>
    %cst_7 = arith.constant 1.000000e+00 : f32
    %20 = vector.broadcast %cst_7 : f32 to vector<8x64xf32>
    %21 = arith.subf %19, %20 : vector<8x64xf32>
    %22 = vector.extract_strided_slice %14 {offsets = [0, 192], sizes = [8, 64], strides = [1, 1]} : vector<8x256xf32> to vector<8x64xf32>
    %23 = arith.mulf %16, %2 : vector<8x64xf32>
    %24 = arith.mulf %15, %21 : vector<8x64xf32>
    %25 = arith.addf %23, %24 : vector<8x64xf32>
    %26 = math.tanh %25 : vector<8x64xf32>
    %27 = arith.mulf %22, %26 : vector<8x64xf32>
    %c1_i32 = arith.constant 1 : i32
    %28 = arith.index_cast %c1_i32 : i32 to index
    %c0_8 = arith.constant 0 : index
    %c0_9 = arith.constant 0 : index
    %29 = vector.load %arg1[%28, %c0_8, %c0_9] : memref<8x8x256xbf16, #tpu.memory_space<vmem>>, vector<1x8x256xbf16>
    %30 = vector.shape_cast %29 : vector<1x8x256xbf16> to vector<8x256xbf16>
    %31 = arith.extf %30 : vector<8x256xbf16> to vector<8x256xf32>
    %32 = arith.truncf %27 : vector<8x64xf32> to vector<8x64xbf16>
    %cst_10 = arith.constant dense<0.000000e+00> : vector<8x256xf32>
    %33 = tpu.matmul %32, %0, %cst_10 {dimension_numbers = #tpu.dot_dimension_numbers<[1], [0], [0], [1], [0, 0, 1, 1], [], []>} : vector<8x64xbf16>, vector<64x256xbf16>, vector<8x256xf32> -> vector<8x256xf32>
    %34 = arith.addf %31, %33 : vector<8x256xf32>
    %35 = arith.negf %34 : vector<8x256xf32>
    %36 = math.exp %35 : vector<8x256xf32>
    %cst_11 = arith.constant 1.000000e+00 : f32
    %37 = vector.broadcast %cst_11 : f32 to vector<8x256xf32>
    %38 = arith.addf %37, %36 : vector<8x256xf32>
    %39 = arith.divf %37, %38 : vector<8x256xf32>
    %40 = vector.extract_strided_slice %39 {offsets = [0, 0], sizes = [8, 64], strides = [1, 1]} : vector<8x256xf32> to vector<8x64xf32>
    %41 = vector.extract_strided_slice %39 {offsets = [0, 64], sizes = [8, 64], strides = [1, 1]} : vector<8x256xf32> to vector<8x64xf32>
    %42 = vector.extract_strided_slice %39 {offsets = [0, 128], sizes = [8, 64], strides = [1, 1]} : vector<8x256xf32> to vector<8x64xf32>
    %cst_12 = arith.constant 2.000000e+00 : f32
    %43 = vector.broadcast %cst_12 : f32 to vector<8x64xf32>
    %44 = arith.mulf %43, %42 : vector<8x64xf32>
    %cst_13 = arith.constant 1.000000e+00 : f32
    %45 = vector.broadcast %cst_13 : f32 to vector<8x64xf32>
    %46 = arith.subf %44, %45 : vector<8x64xf32>
    %47 = vector.extract_strided_slice %39 {offsets = [0, 192], sizes = [8, 64], strides = [1, 1]} : vector<8x256xf32> to vector<8x64xf32>
    %48 = arith.mulf %41, %25 : vector<8x64xf32>
    %49 = arith.mulf %40, %46 : vector<8x64xf32>
    %50 = arith.addf %48, %49 : vector<8x64xf32>
    %51 = math.tanh %50 : vector<8x64xf32>
    %52 = arith.mulf %47, %51 : vector<8x64xf32>
    %c2_i32 = arith.constant 2 : i32
    %53 = arith.index_cast %c2_i32 : i32 to index
    %c0_14 = arith.constant 0 : index
    %c0_15 = arith.constant 0 : index
    %54 = vector.load %arg1[%53, %c0_14, %c0_15] : memref<8x8x256xbf16, #tpu.memory_space<vmem>>, vector<1x8x256xbf16>
    %55 = vector.shape_cast %54 : vector<1x8x256xbf16> to vector<8x256xbf16>
    %56 = arith.extf %55 : vector<8x256xbf16> to vector<8x256xf32>
    %57 = arith.truncf %52 : vector<8x64xf32> to vector<8x64xbf16>
    %cst_16 = arith.constant dense<0.000000e+00> : vector<8x256xf32>
    %58 = tpu.matmul %57, %0, %cst_16 {dimension_numbers = #tpu.dot_dimension_numbers<[1], [0], [0], [1], [0, 0, 1, 1], [], []>} : vector<8x64xbf16>, vector<64x256xbf16>, vector<8x256xf32> -> vector<8x256xf32>
    %59 = arith.addf %56, %58 : vector<8x256xf32>
    %60 = arith.negf %59 : vector<8x256xf32>
    %61 = math.exp %60 : vector<8x256xf32>
    %cst_17 = arith.constant 1.000000e+00 : f32
    %62 = vector.broadcast %cst_17 : f32 to vector<8x256xf32>
    %63 = arith.addf %62, %61 : vector<8x256xf32>
    %64 = arith.divf %62, %63 : vector<8x256xf32>
    %65 = vector.extract_strided_slice %64 {offsets = [0, 0], sizes = [8, 64], strides = [1, 1]} : vector<8x256xf32> to vector<8x64xf32>
    %66 = vector.extract_strided_slice %64 {offsets = [0, 64], sizes = [8, 64], strides = [1, 1]} : vector<8x256xf32> to vector<8x64xf32>
    %67 = vector.extract_strided_slice %64 {offsets = [0, 128], sizes = [8, 64], strides = [1, 1]} : vector<8x256xf32> to vector<8x64xf32>
    %cst_18 = arith.constant 2.000000e+00 : f32
    %68 = vector.broadcast %cst_18 : f32 to vector<8x64xf32>
    %69 = arith.mulf %68, %67 : vector<8x64xf32>
    %cst_19 = arith.constant 1.000000e+00 : f32
    %70 = vector.broadcast %cst_19 : f32 to vector<8x64xf32>
    %71 = arith.subf %69, %70 : vector<8x64xf32>
    %72 = vector.extract_strided_slice %64 {offsets = [0, 192], sizes = [8, 64], strides = [1, 1]} : vector<8x256xf32> to vector<8x64xf32>
    %73 = arith.mulf %66, %50 : vector<8x64xf32>
    %74 = arith.mulf %65, %71 : vector<8x64xf32>
    %75 = arith.addf %73, %74 : vector<8x64xf32>
    %76 = math.tanh %75 : vector<8x64xf32>
    %77 = arith.mulf %72, %76 : vector<8x64xf32>
    %c3_i32 = arith.constant 3 : i32
    %78 = arith.index_cast %c3_i32 : i32 to index
    %c0_20 = arith.constant 0 : index
    %c0_21 = arith.constant 0 : index
    %79 = vector.load %arg1[%78, %c0_20, %c0_21] : memref<8x8x256xbf16, #tpu.memory_space<vmem>>, vector<1x8x256xbf16>
    %80 = vector.shape_cast %79 : vector<1x8x256xbf16> to vector<8x256xbf16>
    %81 = arith.extf %80 : vector<8x256xbf16> to vector<8x256xf32>
    %82 = arith.truncf %77 : vector<8x64xf32> to vector<8x64xbf16>
    %cst_22 = arith.constant dense<0.000000e+00> : vector<8x256xf32>
    %83 = tpu.matmul %82, %0, %cst_22 {dimension_numbers = #tpu.dot_dimension_numbers<[1], [0], [0], [1], [0, 0, 1, 1], [], []>} : vector<8x64xbf16>, vector<64x256xbf16>, vector<8x256xf32> -> vector<8x256xf32>
    %84 = arith.addf %81, %83 : vector<8x256xf32>
    %85 = arith.negf %84 : vector<8x256xf32>
    %86 = math.exp %85 : vector<8x256xf32>
    %cst_23 = arith.constant 1.000000e+00 : f32
    %87 = vector.broadcast %cst_23 : f32 to vector<8x256xf32>
    %88 = arith.addf %87, %86 : vector<8x256xf32>
    %89 = arith.divf %87, %88 : vector<8x256xf32>
    %90 = vector.extract_strided_slice %89 {offsets = [0, 0], sizes = [8, 64], strides = [1, 1]} : vector<8x256xf32> to vector<8x64xf32>
    %91 = vector.extract_strided_slice %89 {offsets = [0, 64], sizes = [8, 64], strides = [1, 1]} : vector<8x256xf32> to vector<8x64xf32>
    %92 = vector.extract_strided_slice %89 {offsets = [0, 128], sizes = [8, 64], strides = [1, 1]} : vector<8x256xf32> to vector<8x64xf32>
    %cst_24 = arith.constant 2.000000e+00 : f32
    %93 = vector.broadcast %cst_24 : f32 to vector<8x64xf32>
    %94 = arith.mulf %93, %92 : vector<8x64xf32>
    %cst_25 = arith.constant 1.000000e+00 : f32
    %95 = vector.broadcast %cst_25 : f32 to vector<8x64xf32>
    %96 = arith.subf %94, %95 : vector<8x64xf32>
    %97 = vector.extract_strided_slice %89 {offsets = [0, 192], sizes = [8, 64], strides = [1, 1]} : vector<8x256xf32> to vector<8x64xf32>
    %98 = arith.mulf %91, %75 : vector<8x64xf32>
    %99 = arith.mulf %90, %96 : vector<8x64xf32>
    %100 = arith.addf %98, %99 : vector<8x64xf32>
    %101 = math.tanh %100 : vector<8x64xf32>
    %102 = arith.mulf %97, %101 : vector<8x64xf32>
    %c4_i32 = arith.constant 4 : i32
    %103 = arith.index_cast %c4_i32 : i32 to index
    %c0_26 = arith.constant 0 : index
    %c0_27 = arith.constant 0 : index
    %104 = vector.load %arg1[%103, %c0_26, %c0_27] : memref<8x8x256xbf16, #tpu.memory_space<vmem>>, vector<1x8x256xbf16>
    %105 = vector.shape_cast %104 : vector<1x8x256xbf16> to vector<8x256xbf16>
    %106 = arith.extf %105 : vector<8x256xbf16> to vector<8x256xf32>
    %107 = arith.truncf %102 : vector<8x64xf32> to vector<8x64xbf16>
    %cst_28 = arith.constant dense<0.000000e+00> : vector<8x256xf32>
    %108 = tpu.matmul %107, %0, %cst_28 {dimension_numbers = #tpu.dot_dimension_numbers<[1], [0], [0], [1], [0, 0, 1, 1], [], []>} : vector<8x64xbf16>, vector<64x256xbf16>, vector<8x256xf32> -> vector<8x256xf32>
    %109 = arith.addf %106, %108 : vector<8x256xf32>
    %110 = arith.negf %109 : vector<8x256xf32>
    %111 = math.exp %110 : vector<8x256xf32>
    %cst_29 = arith.constant 1.000000e+00 : f32
    %112 = vector.broadcast %cst_29 : f32 to vector<8x256xf32>
    %113 = arith.addf %112, %111 : vector<8x256xf32>
    %114 = arith.divf %112, %113 : vector<8x256xf32>
    %115 = vector.extract_strided_slice %114 {offsets = [0, 0], sizes = [8, 64], strides = [1, 1]} : vector<8x256xf32> to vector<8x64xf32>
    %116 = vector.extract_strided_slice %114 {offsets = [0, 64], sizes = [8, 64], strides = [1, 1]} : vector<8x256xf32> to vector<8x64xf32>
    %117 = vector.extract_strided_slice %114 {offsets = [0, 128], sizes = [8, 64], strides = [1, 1]} : vector<8x256xf32> to vector<8x64xf32>
    %cst_30 = arith.constant 2.000000e+00 : f32
    %118 = vector.broadcast %cst_30 : f32 to vector<8x64xf32>
    %119 = arith.mulf %118, %117 : vector<8x64xf32>
    %cst_31 = arith.constant 1.000000e+00 : f32
    %120 = vector.broadcast %cst_31 : f32 to vector<8x64xf32>
    %121 = arith.subf %119, %120 : vector<8x64xf32>
    %122 = vector.extract_strided_slice %114 {offsets = [0, 192], sizes = [8, 64], strides = [1, 1]} : vector<8x256xf32> to vector<8x64xf32>
    %123 = arith.mulf %116, %100 : vector<8x64xf32>
    %124 = arith.mulf %115, %121 : vector<8x64xf32>
    %125 = arith.addf %123, %124 : vector<8x64xf32>
    %126 = math.tanh %125 : vector<8x64xf32>
    %127 = arith.mulf %122, %126 : vector<8x64xf32>
    %c5_i32 = arith.constant 5 : i32
    %128 = arith.index_cast %c5_i32 : i32 to index
    %c0_32 = arith.constant 0 : index
    %c0_33 = arith.constant 0 : index
    %129 = vector.load %arg1[%128, %c0_32, %c0_33] : memref<8x8x256xbf16, #tpu.memory_space<vmem>>, vector<1x8x256xbf16>
    %130 = vector.shape_cast %129 : vector<1x8x256xbf16> to vector<8x256xbf16>
    %131 = arith.extf %130 : vector<8x256xbf16> to vector<8x256xf32>
    %132 = arith.truncf %127 : vector<8x64xf32> to vector<8x64xbf16>
    %cst_34 = arith.constant dense<0.000000e+00> : vector<8x256xf32>
    %133 = tpu.matmul %132, %0, %cst_34 {dimension_numbers = #tpu.dot_dimension_numbers<[1], [0], [0], [1], [0, 0, 1, 1], [], []>} : vector<8x64xbf16>, vector<64x256xbf16>, vector<8x256xf32> -> vector<8x256xf32>
    %134 = arith.addf %131, %133 : vector<8x256xf32>
    %135 = arith.negf %134 : vector<8x256xf32>
    %136 = math.exp %135 : vector<8x256xf32>
    %cst_35 = arith.constant 1.000000e+00 : f32
    %137 = vector.broadcast %cst_35 : f32 to vector<8x256xf32>
    %138 = arith.addf %137, %136 : vector<8x256xf32>
    %139 = arith.divf %137, %138 : vector<8x256xf32>
    %140 = vector.extract_strided_slice %139 {offsets = [0, 0], sizes = [8, 64], strides = [1, 1]} : vector<8x256xf32> to vector<8x64xf32>
    %141 = vector.extract_strided_slice %139 {offsets = [0, 64], sizes = [8, 64], strides = [1, 1]} : vector<8x256xf32> to vector<8x64xf32>
    %142 = vector.extract_strided_slice %139 {offsets = [0, 128], sizes = [8, 64], strides = [1, 1]} : vector<8x256xf32> to vector<8x64xf32>
    %cst_36 = arith.constant 2.000000e+00 : f32
    %143 = vector.broadcast %cst_36 : f32 to vector<8x64xf32>
    %144 = arith.mulf %143, %142 : vector<8x64xf32>
    %cst_37 = arith.constant 1.000000e+00 : f32
    %145 = vector.broadcast %cst_37 : f32 to vector<8x64xf32>
    %146 = arith.subf %144, %145 : vector<8x64xf32>
    %147 = vector.extract_strided_slice %139 {offsets = [0, 192], sizes = [8, 64], strides = [1, 1]} : vector<8x256xf32> to vector<8x64xf32>
    %148 = arith.mulf %141, %125 : vector<8x64xf32>
    %149 = arith.mulf %140, %146 : vector<8x64xf32>
    %150 = arith.addf %148, %149 : vector<8x64xf32>
    %151 = math.tanh %150 : vector<8x64xf32>
    %152 = arith.mulf %147, %151 : vector<8x64xf32>
    %c6_i32 = arith.constant 6 : i32
    %153 = arith.index_cast %c6_i32 : i32 to index
    %c0_38 = arith.constant 0 : index
    %c0_39 = arith.constant 0 : index
    %154 = vector.load %arg1[%153, %c0_38, %c0_39] : memref<8x8x256xbf16, #tpu.memory_space<vmem>>, vector<1x8x256xbf16>
    %155 = vector.shape_cast %154 : vector<1x8x256xbf16> to vector<8x256xbf16>
    %156 = arith.extf %155 : vector<8x256xbf16> to vector<8x256xf32>
    %157 = arith.truncf %152 : vector<8x64xf32> to vector<8x64xbf16>
    %cst_40 = arith.constant dense<0.000000e+00> : vector<8x256xf32>
    %158 = tpu.matmul %157, %0, %cst_40 {dimension_numbers = #tpu.dot_dimension_numbers<[1], [0], [0], [1], [0, 0, 1, 1], [], []>} : vector<8x64xbf16>, vector<64x256xbf16>, vector<8x256xf32> -> vector<8x256xf32>
    %159 = arith.addf %156, %158 : vector<8x256xf32>
    %160 = arith.negf %159 : vector<8x256xf32>
    %161 = math.exp %160 : vector<8x256xf32>
    %cst_41 = arith.constant 1.000000e+00 : f32
    %162 = vector.broadcast %cst_41 : f32 to vector<8x256xf32>
    %163 = arith.addf %162, %161 : vector<8x256xf32>
    %164 = arith.divf %162, %163 : vector<8x256xf32>
    %165 = vector.extract_strided_slice %164 {offsets = [0, 0], sizes = [8, 64], strides = [1, 1]} : vector<8x256xf32> to vector<8x64xf32>
    %166 = vector.extract_strided_slice %164 {offsets = [0, 64], sizes = [8, 64], strides = [1, 1]} : vector<8x256xf32> to vector<8x64xf32>
    %167 = vector.extract_strided_slice %164 {offsets = [0, 128], sizes = [8, 64], strides = [1, 1]} : vector<8x256xf32> to vector<8x64xf32>
    %cst_42 = arith.constant 2.000000e+00 : f32
    %168 = vector.broadcast %cst_42 : f32 to vector<8x64xf32>
    %169 = arith.mulf %168, %167 : vector<8x64xf32>
    %cst_43 = arith.constant 1.000000e+00 : f32
    %170 = vector.broadcast %cst_43 : f32 to vector<8x64xf32>
    %171 = arith.subf %169, %170 : vector<8x64xf32>
    %172 = vector.extract_strided_slice %164 {offsets = [0, 192], sizes = [8, 64], strides = [1, 1]} : vector<8x256xf32> to vector<8x64xf32>
    %173 = arith.mulf %166, %150 : vector<8x64xf32>
    %174 = arith.mulf %165, %171 : vector<8x64xf32>
    %175 = arith.addf %173, %174 : vector<8x64xf32>
    %176 = math.tanh %175 : vector<8x64xf32>
    %177 = arith.mulf %172, %176 : vector<8x64xf32>
    %c7_i32 = arith.constant 7 : i32
    %178 = arith.index_cast %c7_i32 : i32 to index
    %c0_44 = arith.constant 0 : index
    %c0_45 = arith.constant 0 : index
    %179 = vector.load %arg1[%178, %c0_44, %c0_45] : memref<8x8x256xbf16, #tpu.memory_space<vmem>>, vector<1x8x256xbf16>
    %180 = vector.shape_cast %179 : vector<1x8x256xbf16> to vector<8x256xbf16>
    %181 = arith.extf %180 : vector<8x256xbf16> to vector<8x256xf32>
    %182 = arith.truncf %177 : vector<8x64xf32> to vector<8x64xbf16>
    %cst_46 = arith.constant dense<0.000000e+00> : vector<8x256xf32>
    %183 = tpu.matmul %182, %0, %cst_46 {dimension_numbers = #tpu.dot_dimension_numbers<[1], [0], [0], [1], [0, 0, 1, 1], [], []>} : vector<8x64xbf16>, vector<64x256xbf16>, vector<8x256xf32> -> vector<8x256xf32>
    %184 = arith.addf %181, %183 : vector<8x256xf32>
    %185 = arith.negf %184 : vector<8x256xf32>
    %186 = math.exp %185 : vector<8x256xf32>
    %cst_47 = arith.constant 1.000000e+00 : f32
    %187 = vector.broadcast %cst_47 : f32 to vector<8x256xf32>
    %188 = arith.addf %187, %186 : vector<8x256xf32>
    %189 = arith.divf %187, %188 : vector<8x256xf32>
    %190 = vector.extract_strided_slice %189 {offsets = [0, 0], sizes = [8, 64], strides = [1, 1]} : vector<8x256xf32> to vector<8x64xf32>
    %191 = vector.extract_strided_slice %189 {offsets = [0, 64], sizes = [8, 64], strides = [1, 1]} : vector<8x256xf32> to vector<8x64xf32>
    %192 = vector.extract_strided_slice %189 {offsets = [0, 128], sizes = [8, 64], strides = [1, 1]} : vector<8x256xf32> to vector<8x64xf32>
    %cst_48 = arith.constant 2.000000e+00 : f32
    %193 = vector.broadcast %cst_48 : f32 to vector<8x64xf32>
    %194 = arith.mulf %193, %192 : vector<8x64xf32>
    %cst_49 = arith.constant 1.000000e+00 : f32
    %195 = vector.broadcast %cst_49 : f32 to vector<8x64xf32>
    %196 = arith.subf %194, %195 : vector<8x64xf32>
    %197 = vector.extract_strided_slice %189 {offsets = [0, 192], sizes = [8, 64], strides = [1, 1]} : vector<8x256xf32> to vector<8x64xf32>
    %198 = arith.mulf %191, %175 : vector<8x64xf32>
    %199 = arith.mulf %190, %196 : vector<8x64xf32>
    %200 = arith.addf %198, %199 : vector<8x64xf32>
    %201 = math.tanh %200 : vector<8x64xf32>
    %202 = arith.mulf %197, %201 : vector<8x64xf32>
    %c8_i32 = arith.constant 8 : i32
    %203 = arith.truncf %202 : vector<8x64xf32> to vector<8x64xbf16>
    %c0_50 = arith.constant 0 : index
    %c0_51 = arith.constant 0 : index
    %204 = vector.load %arg3[%c0_50, %c0_51] : memref<64x128xbf16, #tpu.memory_space<vmem>>, vector<64x128xbf16>
    %cst_52 = arith.constant dense<0.000000e+00> : vector<8x128xf32>
    %205 = tpu.matmul %203, %204, %cst_52 {dimension_numbers = #tpu.dot_dimension_numbers<[1], [0], [0], [1], [0, 0, 1, 1], [], []>} : vector<8x64xbf16>, vector<64x128xbf16>, vector<8x128xf32> -> vector<8x128xf32>
    %c0_53 = arith.constant 0 : index
    %c0_54 = arith.constant 0 : index
    %206 = vector.load %arg4[%c0_53, %c0_54] : memref<1x128xf32, #tpu.memory_space<vmem>>, vector<1x128xf32>
    %207 = vector.broadcast %206 : vector<1x128xf32> to vector<8x128xf32>
    %208 = arith.addf %205, %207 : vector<8x128xf32>
    %c0_55 = arith.constant 0 : index
    %c0_56 = arith.constant 0 : index
    %209 = vector.load %arg5[%c0_55, %c0_56] : memref<8x128xf32, #tpu.memory_space<vmem>>, vector<8x128xf32>
    tpu.vector_store %arg5[%c0_55, %c0_56], %208 {strides = array<i32>} : memref<8x128xf32, #tpu.memory_space<vmem>>, vector<8x128xf32>,
    return
  }
  func.func @transform_0(%arg0: i32) -> (i32, i32, i32) {
    %c0_i32 = arith.constant 0 : i32
    %c0_i32_0 = arith.constant 0 : i32
    %c0_i32_1 = arith.constant 0 : i32
    return %c0_i32, %arg0, %c0_i32_0 : i32, i32, i32
  }
  func.func @transform_1(%arg0: i32) -> (i32, i32) {
    %c0_i32 = arith.constant 0 : i32
    %c0_i32_0 = arith.constant 0 : i32
    %c0_i32_1 = arith.constant 0 : i32
    return %c0_i32, %c0_i32_0 : i32, i32
  }
  func.func @transform_2(%arg0: i32) -> (i32, i32) {
    %c0_i32 = arith.constant 0 : i32
    %c0_i32_0 = arith.constant 0 : i32
    %c0_i32_1 = arith.constant 0 : i32
    return %c0_i32, %c0_i32_0 : i32, i32
  }
  func.func @transform_3(%arg0: i32) -> (i32, i32) {
    %c0_i32 = arith.constant 0 : i32
    %c0_i32_0 = arith.constant 0 : i32
    %c0_i32_1 = arith.constant 0 : i32
    return %c0_i32, %c0_i32_0 : i32, i32
  }
  func.func @transform_4(%arg0: i32) -> (i32, i32) {
    %c0_i32 = arith.constant 0 : i32
    %c0_i32_0 = arith.constant 0 : i32
    return %arg0, %c0_i32 : i32, i32
  }
}

</mosaic_0001>

<bundles_post_ra>
// kernel: rnn_forward.1
= control target key start
LH: loop header
LB: loop body
LE: loop exit
PB: predicated region body
PF: predicated region fallthrough
CT: control target
= control target key end

     0   :  { %v938_v1 = vmov 0   ;;  %s939_s6 = smov 64   ;;  %vm69_vm0 = vcmask 523264   ;;  %vm941_vm1 = vmmov 0   ;;  %s1146_s1 = inlined_call_operand.vmem [shape: bf16[64,256], index: 1, kind: input, shape index: {}]   ;;  %s1147_s0 = inlined_call_operand.vmem [shape: bf16[8,8,256], index: 0, kind: input, shape index: {}]   ;;  %s1148_s2 = inlined_call_operand.vmem [shape: bf16[64,128], index: 2, kind: input, shape index: {}]   ;;  %s1149_s3 = inlined_call_operand.vmem [shape: f32[1,128], index: 3, kind: input, shape index: {}]   ;;  %s1150_s4 = inlined_call_operand.vmem [shape: f32[8,128], index: 4, kind: output, shape index: {}]  }
   0x1   :  { %v970_v0 = vld [vmem:[%s1146_s1 + $0x34] ss:$8 sps:$4 sm:$0xff]   ;;  %105 = vmatprep.mubr.bf16.mxu0 %v938_v1  ;;  %182 = vmatprep.mubr.bf16.mxu1 %v938_v1  ;;  %v977_v2 = vld [vmem:[%s1146_s1 + $0x30] ss:$8 sps:$4 sm:$0xff]   ;;  %v983_v3 = vld [vmem:[%s1146_s1 + $0x24] ss:$8 sps:$4 sm:$0xff]  }
   0x2   :  { %81 = vmatprep.subr.bf16.mxu0 %v970_v0  ;;  %158 = vmatprep.subr.bf16.mxu1 %v970_v0  ;;  %v990_v4 = vld [vmem:[%s1146_s1 + $0x20] ss:$8 sps:$4 sm:$0xff]   ;;  %v997_v5 = vld [vmem:[%s1146_s1 + $0x14] ss:$8 sps:$4 sm:$0xff]   ;;  %v1004_v6 = vld [vmem:[%s1146_s1 + $0x10] ss:$8 sps:$4 sm:$0xff]  }
   0x3   :  { %82 = vmatpush1.bf16.msra.mxu0 %v977_v2  ;;  %159 = vmatpush1.bf16.msra.mxu1 %v977_v2  ;;  %v1011_v7 = vld [vmem:[%s1146_s1 + $0x4] ss:$8 sps:$4 sm:$0xff]   ;;  %v1018_v8 = vld [vmem:[%s1146_s1] ss:$8 sps:$4 sm:$0xff]   ;;  %v785_v63 = vld [vmem:[%s1147_s0 + $0x10] sm:$0xff] }
   0x4   :  { %83 = vmatprep.subr.bf16.mxu0 %v983_v3  ;;  %160 = vmatprep.subr.bf16.mxu1 %v983_v3  ;;  %v26_v9 = vld [vmem:[%s1147_s0] sm:$0xff]  ;;  %v780_v36 = vld [vmem:[%s1147_s0 + $0x8] sm:$0xff] }
   0x5   :  { %v27_v10 = vunpack.c.l.bf16 %v26_v9  ;;  %v28_v11 = vunpack.c.h.bf16 %v26_v9  ;;  %v141_v37 = vunpack.c.l.bf16 %v780_v36  ;;  %v142_v38 = vunpack.c.h.bf16 %v780_v36 }
   0x6   :  { %v218_v9 = vunpack.c.l.bf16 %v785_v63 }
   0x7   :  { %84 = vmatpush1.bf16.msra.mxu0 %v990_v4  ;;  %161 = vmatpush1.bf16.msra.mxu1 %v990_v4 }
   0x8   :  { %85 = vmatprep.subr.bf16.mxu0 %v997_v5  ;;  %162 = vmatprep.subr.bf16.mxu1 %v997_v5 }
   0xb   :  { %86 = vmatpush1.bf16.msra.mxu0 %v1004_v6  ;;  %163 = vmatpush1.bf16.msra.mxu1 %v1004_v6 }
   0xc   :  { %87 = vmatprep.subr.bf16.mxu0 %v1011_v7  ;;  %164 = vmatprep.subr.bf16.mxu1 %v1011_v7 }
   0xf   :  { %88 = vmatpush1.bf16.msra.mxu0 %v1018_v8  ;;  %165 = vmatpush1.bf16.msra.mxu1 %v1018_v8 }
  0x10   :  { %235 = vmatprep.subr.bf16.mxu0 %v970_v0  ;;  %312 = vmatprep.subr.bf16.mxu1 %v970_v0 }
  0x12   :  { %106 = vmatmul.mubr.bf16.vlgmr.msra.gmra.mxu0 %v938_v1 }
  0x13   :  { %236 = vmatpush1.bf16.msra.mxu0 %v977_v2  ;;  %259 = vmatprep.mubr.bf16.mxu0 %v938_v1 }
  0x14   :  { %237 = vmatprep.subr.bf16.mxu0 %v983_v3 }
  0x17   :  { %238 = vmatpush1.bf16.msra.mxu0 %v990_v4 }
  0x18   :  { %239 = vmatprep.subr.bf16.mxu0 %v997_v5 }
  0x1b   :  { %240 = vmatpush1.bf16.msra.mxu0 %v1004_v6 }
  0x1c   :  { %241 = vmatprep.subr.bf16.mxu0 %v1011_v7 }
  0x1f   :  { %242 = vmatpush1.bf16.msra.mxu0 %v1018_v8 }
  0x20   :  { %389 = vmatprep.subr.bf16.mxu0 %v970_v0 }
  0xd2   :  { %v107_v12 = vpop.f32.mrf.mxu0 }
  0xd3   :  { %v114_v13 = vadd.f32 %v107_v12, %v27_v10  ;;  %v219_v10 = vunpack.c.h.bf16 %v785_v63 }
  0xd4   :  { %v109_v14 = vpop.f32.mrf.mxu0 }
  0xd5   :  { %v777_v15 = vmul.f32 -1.442695, %v114_v13  ;;  %v115_v16 = vadd.f32 %v109_v14, %v28_v11 }
  0xd6   :  { %v111_v17 = vpop.f32.mrf.mxu0 }
  0xd7   :  { %v778_v18 = vmul.f32 -1.442695, %v115_v16  ;;  %858 = vpow2.f32 %v777_v15 }
  0xd8   :  { %v112_v19 = vpop.f32.mrf.mxu0 }
  0xd9   :  { %860 = vpow2.f32 %v778_v18 }
  0xe4   :  { %v859_v20 = vpop.eup %858 }
  0xe5   :  { %v122_v23 = vadd.f32 1.0, %v859_v20 }
  0xe6   :  { %v861_v21 = vpop.eup %860 }
  0xe7   :  { %v123_v22 = vadd.f32 1.0, %v861_v21 }
  0xe9   :  { %862 = vrcp.f32 %v123_v22 }
  0xea   :  { %864 = vrcp.f32 %v122_v23 }
  0xf6   :  { %v863_v24 = vpop.eup %862 }
  0xf7   :  { %v128_v25 = vmul.f32 2.0, %v863_v24  ;;  %v865_v27 = vpop.eup %864 }
  0xf8   :  { %v130_v29 = vmul.f32 0.0, %v865_v27 }
  0xf9   :  { %v779_v26 = vadd.f32 -1.0, %v128_v25 }
  0xfb   :  { %v131_v28 = vmul.f32 %v865_v27, %v779_v26 }
  0xfd   :  { %133 = vrot.lane.b32.xlu0 %v131_v28, %s939_s6 }
 0x16f   :  { %v134_v30 = vpop.permute.xlu0 %133 }
 0x170   :  { %v136_v31 = vadd.f32 %v134_v30, %v130_v29 }
 0x172   :  { %866 = vtanh.f32 %v136_v31 }
 0x17f   :  { %v867_v32 = vpop.eup %866 }
 0x180   :  { %v138_v33 = vmul.f32 %v867_v32, %v863_v24 }
 0x182   :  { %v143_v34 = vpack.c.bf16 %v138_v33, %v138_v33 }
 0x184   :  { %145 = vrot.lane.b32.xlu0 %v143_v34, %s939_s6 }
 0x1f6   :  { %v146_v35 = vpop.permute.xlu0 %145 }
 0x1f7   :  { %781 = vmatmul.mubr.msk.bf16.vlgmr.msra.gmra.mxu1 %vm69_vm0, %v146_v35  ;;  %v790_v35 = vld [vmem:[%s1147_s0 + $0x18] sm:$0xff] }
 0x1f8   :  { %313 = vmatpush1.bf16.msra.mxu1 %v977_v2  ;;  %336 = vmatprep.mubr.bf16.mxu1 %v938_v1  ;;  %v295_v36 = vunpack.c.l.bf16 %v790_v35 }
 0x1f9   :  { %314 = vmatprep.subr.bf16.mxu1 %v983_v3 }
 0x1fc   :  { %315 = vmatpush1.bf16.msra.mxu1 %v990_v4 }
 0x1fd   :  { %316 = vmatprep.subr.bf16.mxu1 %v997_v5 }
 0x200   :  { %317 = vmatpush1.bf16.msra.mxu1 %v1004_v6 }
 0x201   :  { %318 = vmatprep.subr.bf16.mxu1 %v1011_v7 }
 0x204   :  { %319 = vmatpush1.bf16.msra.mxu1 %v1018_v8 }
 0x205   :  { %466 = vmatprep.subr.bf16.mxu1 %v970_v0 }
 0x2b7   :  { %v184_v39 = vpop.f32.mrf.mxu1 }
 0x2b8   :  { %v191_v40 = vadd.f32 %v184_v39, %v141_v37  ;;  %v296_v37 = vunpack.c.h.bf16 %v790_v35 }
 0x2b9   :  { %v186_v41 = vpop.f32.mrf.mxu1 }
 0x2ba   :  { %v782_v42 = vmul.f32 -1.442695, %v191_v40  ;;  %v192_v43 = vadd.f32 %v186_v41, %v142_v38 }
 0x2bb   :  { %v188_v44 = vpop.f32.mrf.mxu1 }
 0x2bc   :  { %v783_v45 = vmul.f32 -1.442695, %v192_v43  ;;  %868 = vpow2.f32 %v782_v42 }
 0x2bd   :  { %v189_v46 = vpop.f32.mrf.mxu1 }
 0x2be   :  { %870 = vpow2.f32 %v783_v45 }
 0x2c9   :  { %v869_v47 = vpop.eup %868 }
 0x2ca   :  { %v199_v50 = vadd.f32 1.0, %v869_v47 }
 0x2cb   :  { %v871_v48 = vpop.eup %870 }
 0x2cc   :  { %v200_v49 = vadd.f32 1.0, %v871_v48 }
 0x2ce   :  { %872 = vrcp.f32 %v200_v49 }
 0x2cf   :  { %874 = vrcp.f32 %v199_v50 }
 0x2db   :  { %v873_v51 = vpop.eup %872 }
 0x2dc   :  { %v205_v52 = vmul.f32 2.0, %v873_v51  ;;  %v875_v54 = vpop.eup %874 }
 0x2dd   :  { %v207_v56 = vmul.f32 %v875_v54, %v136_v31 }
 0x2de   :  { %v784_v53 = vadd.f32 -1.0, %v205_v52 }
 0x2e0   :  { %v208_v55 = vmul.f32 %v875_v54, %v784_v53 }
 0x2e2   :  { %210 = vrot.lane.b32.xlu1 %v208_v55, %s939_s6 }
 0x354   :  { %v211_v57 = vpop.permute.xlu1 %210 }
 0x355   :  { %v213_v58 = vadd.f32 %v211_v57, %v207_v56 }
 0x357   :  { %876 = vtanh.f32 %v213_v58 }
 0x364   :  { %v877_v59 = vpop.eup %876 }
 0x365   :  { %v215_v60 = vmul.f32 %v877_v59, %v873_v51 }
 0x367   :  { %v220_v61 = vpack.c.bf16 %v215_v60, %v215_v60 }
 0x369   :  { %222 = vrot.lane.b32.xlu1 %v220_v61, %s939_s6  ;;  %v795_v61 = vld [vmem:[%s1147_s0 + $0x20] sm:$0xff] }
 0x36a   :  { %v373_v63 = vunpack.c.h.bf16 %v795_v61 }
 0x3db   :  { %v223_v62 = vpop.permute.xlu1 %222 }
 0x3dc   :  { %786 = vmatmul.mubr.msk.bf16.vlgmr.msra.gmra.mxu0 %vm69_vm0, %v223_v62  ;;  %v372_v62 = vunpack.c.l.bf16 %v795_v61 }
 0x3dd   :  { %390 = vmatpush1.bf16.msra.mxu0 %v977_v2  ;;  %413 = vmatprep.mubr.bf16.mxu0 %v938_v1 }
 0x3de   :  { %391 = vmatprep.subr.bf16.mxu0 %v983_v3 }
 0x3e1   :  { %392 = vmatpush1.bf16.msra.mxu0 %v990_v4 }
 0x3e2   :  { %393 = vmatprep.subr.bf16.mxu0 %v997_v5 }
 0x3e5   :  { %394 = vmatpush1.bf16.msra.mxu0 %v1004_v6 }
 0x3e6   :  { %395 = vmatprep.subr.bf16.mxu0 %v1011_v7 }
 0x3e9   :  { %396 = vmatpush1.bf16.msra.mxu0 %v1018_v8 }
 0x3ea   :  { %543 = vmatprep.subr.bf16.mxu0 %v970_v0 }
 0x49c   :  { %v261_v11 = vpop.f32.mrf.mxu0 }
 0x49d   :  { %v268_v12 = vadd.f32 %v261_v11, %v218_v9 }
 0x49e   :  { %v263_v13 = vpop.f32.mrf.mxu0 }
 0x49f   :  { %v787_v14 = vmul.f32 -1.442695, %v268_v12  ;;  %v269_v15 = vadd.f32 %v263_v13, %v219_v10 }
 0x4a0   :  { %v265_v16 = vpop.f32.mrf.mxu0 }
 0x4a1   :  { %v788_v17 = vmul.f32 -1.442695, %v269_v15  ;;  %878 = vpow2.f32 %v787_v14 }
 0x4a2   :  { %v266_v18 = vpop.f32.mrf.mxu0 }
 0x4a3   :  { %880 = vpow2.f32 %v788_v17 }
 0x4ae   :  { %v879_v19 = vpop.eup %878 }
 0x4af   :  { %v276_v22 = vadd.f32 1.0, %v879_v19 }
 0x4b0   :  { %v881_v20 = vpop.eup %880 }
 0x4b1   :  { %v277_v21 = vadd.f32 1.0, %v881_v20 }
 0x4b3   :  { %882 = vrcp.f32 %v277_v21 }
 0x4b4   :  { %884 = vrcp.f32 %v276_v22 }
 0x4c0   :  { %v883_v23 = vpop.eup %882 }
 0x4c1   :  { %v282_v24 = vmul.f32 2.0, %v883_v23  ;;  %v885_v26 = vpop.eup %884 }
 0x4c2   :  { %v284_v28 = vmul.f32 %v885_v26, %v213_v58 }
 0x4c3   :  { %v789_v25 = vadd.f32 -1.0, %v282_v24 }
 0x4c5   :  { %v285_v27 = vmul.f32 %v885_v26, %v789_v25 }
 0x4c7   :  { %287 = vrot.lane.b32.xlu0 %v285_v27, %s939_s6 }
 0x539   :  { %v288_v29 = vpop.permute.xlu0 %287 }
 0x53a   :  { %v290_v30 = vadd.f32 %v288_v29, %v284_v28 }
 0x53c   :  { %886 = vtanh.f32 %v290_v30 }
 0x549   :  { %v887_v31 = vpop.eup %886 }
 0x54a   :  { %v292_v32 = vmul.f32 %v887_v31, %v883_v23 }
 0x54c   :  { %v297_v33 = vpack.c.bf16 %v292_v32, %v292_v32 }
 0x54e   :  { %299 = vrot.lane.b32.xlu1 %v297_v33, %s939_s6  ;;  %v800_v33 = vld [vmem:[%s1147_s0 + $0x28] sm:$0xff] }
 0x5c0   :  { %v300_v34 = vpop.permute.xlu1 %299 }
 0x5c1   :  { %791 = vmatmul.mubr.msk.bf16.vlgmr.msra.gmra.mxu1 %vm69_vm0, %v300_v34  ;;  %v449_v34 = vunpack.c.l.bf16 %v800_v33 }
 0x5c2   :  { %467 = vmatpush1.bf16.msra.mxu1 %v977_v2  ;;  %490 = vmatprep.mubr.bf16.mxu1 %v938_v1 }
 0x5c3   :  { %468 = vmatprep.subr.bf16.mxu1 %v983_v3 }
 0x5c6   :  { %469 = vmatpush1.bf16.msra.mxu1 %v990_v4 }
 0x5c7   :  { %470 = vmatprep.subr.bf16.mxu1 %v997_v5 }
 0x5ca   :  { %471 = vmatpush1.bf16.msra.mxu1 %v1004_v6 }
 0x5cb   :  { %472 = vmatprep.subr.bf16.mxu1 %v1011_v7 }
 0x5ce   :  { %473 = vmatpush1.bf16.msra.mxu1 %v1018_v8 }
 0x5cf   :  { %620 = vmatprep.subr.bf16.mxu1 %v970_v0 }
 0x681   :  { %v338_v38 = vpop.f32.mrf.mxu1 }
 0x682   :  { %v345_v39 = vadd.f32 %v338_v38, %v295_v36 }
 0x683   :  { %v340_v40 = vpop.f32.mrf.mxu1 }
 0x684   :  { %v792_v41 = vmul.f32 -1.442695, %v345_v39  ;;  %v346_v42 = vadd.f32 %v340_v40, %v296_v37 }
 0x685   :  { %v342_v43 = vpop.f32.mrf.mxu1 }
 0x686   :  { %v793_v44 = vmul.f32 -1.442695, %v346_v42  ;;  %888 = vpow2.f32 %v792_v41 }
 0x687   :  { %v343_v45 = vpop.f32.mrf.mxu1 }
 0x688   :  { %890 = vpow2.f32 %v793_v44 }
 0x693   :  { %v889_v46 = vpop.eup %888 }
 0x694   :  { %v353_v0 = vadd.f32 1.0, %v889_v46 }
 0x695   :  { %v891_v47 = vpop.eup %890 }
 0x696   :  { %v354_v48 = vadd.f32 1.0, %v891_v47 }
 0x698   :  { %892 = vrcp.f32 %v354_v48 }
 0x699   :  { %894 = vrcp.f32 %v353_v0 }
 0x6a5   :  { %v893_v49 = vpop.eup %892 }
 0x6a6   :  { %v359_v50 = vmul.f32 2.0, %v893_v49  ;;  %v895_v52 = vpop.eup %894 }
 0x6a7   :  { %v361_v54 = vmul.f32 %v895_v52, %v290_v30 }
 0x6a8   :  { %v794_v51 = vadd.f32 -1.0, %v359_v50 }
 0x6aa   :  { %v362_v53 = vmul.f32 %v895_v52, %v794_v51  ;;  %v805_v51 = vld [vmem:[%s1147_s0 + $0x30] sm:$0xff] }
 0x6ab   :  { %v526_v52 = vunpack.c.l.bf16 %v805_v51 }
 0x6ac   :  { %364 = vrot.lane.b32.xlu0 %v362_v53, %s939_s6  ;;  %v527_v53 = vunpack.c.h.bf16 %v805_v51 }
 0x71e   :  { %v365_v55 = vpop.permute.xlu0 %364 }
 0x71f   :  { %v367_v56 = vadd.f32 %v365_v55, %v361_v54 }
 0x721   :  { %896 = vtanh.f32 %v367_v56 }
 0x72e   :  { %v897_v57 = vpop.eup %896 }
 0x72f   :  { %v369_v58 = vmul.f32 %v897_v57, %v893_v49 }
 0x731   :  { %v374_v59 = vpack.c.bf16 %v369_v58, %v369_v58 }
 0x733   :  { %376 = vrot.lane.b32.xlu1 %v374_v59, %s939_s6 }
 0x7a5   :  { %v377_v60 = vpop.permute.xlu1 %376 }
 0x7a6   :  { %796 = vmatmul.mubr.msk.bf16.vlgmr.msra.gmra.mxu0 %vm69_vm0, %v377_v60 }
 0x7a7   :  { %544 = vmatpush1.bf16.msra.mxu0 %v977_v2  ;;  %567 = vmatprep.mubr.bf16.mxu0 %v938_v1 }
 0x7a8   :  { %545 = vmatprep.subr.bf16.mxu0 %v983_v3 }
 0x7ab   :  { %546 = vmatpush1.bf16.msra.mxu0 %v990_v4 }
 0x7ac   :  { %547 = vmatprep.subr.bf16.mxu0 %v997_v5 }
 0x7af   :  { %548 = vmatpush1.bf16.msra.mxu0 %v1004_v6 }
 0x7b0   :  { %549 = vmatprep.subr.bf16.mxu0 %v1011_v7 }
 0x7b3   :  { %550 = vmatpush1.bf16.msra.mxu0 %v1018_v8 }
 0x866   :  { %v415_v9 = vpop.f32.mrf.mxu0 }
 0x867   :  { %v422_v10 = vadd.f32 %v415_v9, %v372_v62 }
 0x868   :  { %v417_v11 = vpop.f32.mrf.mxu0 }
 0x869   :  { %v797_v12 = vmul.f32 -1.442695, %v422_v10  ;;  %v423_v13 = vadd.f32 %v417_v11, %v373_v63 }
 0x86a   :  { %v419_v14 = vpop.f32.mrf.mxu0 }
 0x86b   :  { %v798_v15 = vmul.f32 -1.442695, %v423_v13  ;;  %898 = vpow2.f32 %v797_v12 }
 0x86c   :  { %v420_v16 = vpop.f32.mrf.mxu0 }
 0x86d   :  { %900 = vpow2.f32 %v798_v15 }
 0x878   :  { %v899_v17 = vpop.eup %898 }
 0x879   :  { %v430_v20 = vadd.f32 1.0, %v899_v17 }
 0x87a   :  { %v901_v18 = vpop.eup %900 }
 0x87b   :  { %v431_v19 = vadd.f32 1.0, %v901_v18 }
 0x87d   :  { %902 = vrcp.f32 %v431_v19 }
 0x87e   :  { %904 = vrcp.f32 %v430_v20 }
 0x88a   :  { %v903_v21 = vpop.eup %902 }
 0x88b   :  { %v436_v22 = vmul.f32 2.0, %v903_v21  ;;  %v905_v24 = vpop.eup %904 }
 0x88c   :  { %v438_v26 = vmul.f32 %v905_v24, %v367_v56 }
 0x88d   :  { %v799_v23 = vadd.f32 -1.0, %v436_v22 }
 0x88f   :  { %v439_v25 = vmul.f32 %v905_v24, %v799_v23  ;;  %v810_v23 = vld [vmem:[%s1147_s0 + $0x38] sm:$0xff] }
 0x890   :  { %v603_v24 = vunpack.c.l.bf16 %v810_v23 }
 0x891   :  { %441 = vrot.lane.b32.xlu0 %v439_v25, %s939_s6  ;;  %v604_v25 = vunpack.c.h.bf16 %v810_v23 }
 0x903   :  { %v442_v27 = vpop.permute.xlu0 %441 }
 0x904   :  { %v444_v28 = vadd.f32 %v442_v27, %v438_v26 }
 0x906   :  { %906 = vtanh.f32 %v444_v28 }
 0x913   :  { %v907_v29 = vpop.eup %906 }
 0x914   :  { %v446_v30 = vmul.f32 %v907_v29, %v903_v21 }
 0x916   :  { %v451_v31 = vpack.c.bf16 %v446_v30, %v446_v30 }
 0x918   :  { %453 = vrot.lane.b32.xlu1 %v451_v31, %s939_s6 }
 0x98a   :  { %v454_v32 = vpop.permute.xlu1 %453 }
 0x98b   :  { %801 = vmatmul.mubr.msk.bf16.vlgmr.msra.gmra.mxu1 %vm69_vm0, %v454_v32 }
 0x98c   :  { %621 = vmatpush1.bf16.msra.mxu1 %v977_v2  ;;  %644 = vmatprep.mubr.bf16.mxu1 %v938_v1  ;;  %v450_v2 = vunpack.c.h.bf16 %v800_v33 }
 0x98d   :  { %622 = vmatprep.subr.bf16.mxu1 %v983_v3 }
 0x990   :  { %623 = vmatpush1.bf16.msra.mxu1 %v990_v4 }
 0x991   :  { %624 = vmatprep.subr.bf16.mxu1 %v997_v5 }
 0x994   :  { %625 = vmatpush1.bf16.msra.mxu1 %v1004_v6 }
 0x995   :  { %626 = vmatprep.subr.bf16.mxu1 %v1011_v7 }
 0x998   :  { %627 = vmatpush1.bf16.msra.mxu1 %v1018_v8 }
 0xa4b   :  { %v492_v35 = vpop.f32.mrf.mxu1 }
 0xa4c   :  { %v499_v1 = vadd.f32 %v492_v35, %v449_v34 }
 0xa4d   :  { %v494_v36 = vpop.f32.mrf.mxu1 }
 0xa4e   :  { %v802_v3 = vmul.f32 -1.442695, %v499_v1  ;;  %v500_v37 = vadd.f32 %v494_v36, %v450_v2 }
 0xa4f   :  { %v496_v4 = vpop.f32.mrf.mxu1 }
 0xa50   :  { %v803_v38 = vmul.f32 -1.442695, %v500_v37  ;;  %908 = vpow2.f32 %v802_v3 }
 0xa51   :  { %v497_v5 = vpop.f32.mrf.mxu1 }
 0xa52   :  { %910 = vpow2.f32 %v803_v38  ;;  %v940_v5 = vmov 0.0  }
 0xa53   :  { %826 = vmatprep.subr.bf16.mxu0 %v940_v5 }
 0xa5d   :  { %v909_v6 = vpop.eup %908 }
 0xa5e   :  { %v507_v8 = vadd.f32 1.0, %v909_v6  ;;  %v854_v6 = vld [vmem:[%s1148_s2 + $0x18] sm:$0xff]  }
 0xa5f   :  { %v911_v7 = vpop.eup %910 }
 0xa60   :  { %v508_v39 = vadd.f32 1.0, %v911_v7  ;;  %v855_v7 = vld [vmem:[%s1148_s2 + $0x10] sm:$0xff]  }
 0xa62   :  { %912 = vrcp.f32 %v508_v39  ;;  %v856_v39 = vld [vmem:[%s1148_s2 + $0x8] sm:$0xff]  }
 0xa63   :  { %914 = vrcp.f32 %v507_v8  ;;  %v857_v8 = vld [vmem:[%s1148_s2] sm:$0xff]  }
 0xa6f   :  { %v913_v40 = vpop.eup %912 }
 0xa70   :  { %v513_v41 = vmul.f32 2.0, %v913_v40  ;;  %v915_v43 = vpop.eup %914 }
 0xa71   :  { %v515_v45 = vmul.f32 %v915_v43, %v444_v28 }
 0xa72   :  { %v804_v42 = vadd.f32 -1.0, %v513_v41 }
 0xa74   :  { %v516_v44 = vmul.f32 %v915_v43, %v804_v42 }
 0xa76   :  { %518 = vrot.lane.b32.xlu0 %v516_v44, %s939_s6 }
 0xae8   :  { %v519_v46 = vpop.permute.xlu0 %518 }
 0xae9   :  { %v521_v47 = vadd.f32 %v519_v46, %v515_v45 }
 0xaeb   :  { %916 = vtanh.f32 %v521_v47 }
 0xaf8   :  { %v917_v48 = vpop.eup %916 }
 0xaf9   :  { %v523_v0 = vmul.f32 %v917_v48, %v913_v40 }
 0xafb   :  { %v528_v49 = vpack.c.bf16 %v523_v0, %v523_v0 }
 0xafd   :  { %530 = vrot.lane.b32.xlu1 %v528_v49, %s939_s6 }
 0xb6f   :  { %v531_v50 = vpop.permute.xlu1 %530 }
 0xb70   :  { %806 = vmatmul.mubr.msk.bf16.vlgmr.msra.gmra.mxu0 %vm69_vm0, %v531_v50 }
 0xb71   :  { %834 = vmatprep.mubr.msk.bf16.mxu0 %vm941_vm1, %v940_v5  ;;  %827 = vmatpush3.bf16.msra.mxu0 %v854_v6 }
 0xb72   :  { %828 = vmatprep.subr.bf16.mxu0 %v940_v5 }
 0xb75   :  { %829 = vmatpush3.bf16.msra.mxu0 %v855_v7 }
 0xb76   :  { %830 = vmatprep.subr.bf16.mxu0 %v940_v5 }
 0xb79   :  { %831 = vmatpush3.bf16.msra.mxu0 %v856_v39 }
 0xb7a   :  { %832 = vmatprep.subr.bf16.mxu0 %v940_v5 }
 0xb7d   :  { %833 = vmatpush3.bf16.msra.mxu0 %v857_v8 }
 0xc30   :  { %v569_v54 = vpop.f32.mrf.mxu0 }
 0xc31   :  { %v576_v55 = vadd.f32 %v569_v54, %v526_v52 }
 0xc32   :  { %v571_v56 = vpop.f32.mrf.mxu0 }
 0xc33   :  { %v807_v57 = vmul.f32 -1.442695, %v576_v55  ;;  %v577_v58 = vadd.f32 %v571_v56, %v527_v53 }
 0xc34   :  { %v573_v59 = vpop.f32.mrf.mxu0 }
 0xc35   :  { %v808_v60 = vmul.f32 -1.442695, %v577_v58  ;;  %918 = vpow2.f32 %v807_v57 }
 0xc36   :  { %v574_v61 = vpop.f32.mrf.mxu0 }
 0xc37   :  { %920 = vpow2.f32 %v808_v60 }
 0xc42   :  { %v919_v62 = vpop.eup %918 }
 0xc43   :  { %v584_v10 = vadd.f32 1.0, %v919_v62 }
 0xc44   :  { %v921_v63 = vpop.eup %920 }
 0xc45   :  { %v585_v9 = vadd.f32 1.0, %v921_v63 }
 0xc47   :  { %922 = vrcp.f32 %v585_v9 }
 0xc48   :  { %924 = vrcp.f32 %v584_v10 }
 0xc54   :  { %v923_v11 = vpop.eup %922 }
 0xc55   :  { %v590_v12 = vmul.f32 2.0, %v923_v11  ;;  %v925_v14 = vpop.eup %924 }
 0xc56   :  { %v592_v16 = vmul.f32 %v925_v14, %v521_v47  ;;  %v815_v47 = vld [vmem:[%s1149_s3] ss:$0 sm:$0xff] }
 0xc57   :  { %v809_v13 = vadd.f32 -1.0, %v590_v12 }
 0xc59   :  { %v593_v15 = vmul.f32 %v925_v14, %v809_v13 }
 0xc5b   :  { %595 = vrot.lane.b32.xlu0 %v593_v15, %s939_s6 }
 0xccd   :  { %v596_v17 = vpop.permute.xlu0 %595 }
 0xcce   :  { %v598_v18 = vadd.f32 %v596_v17, %v592_v16 }
 0xcd0   :  { %926 = vtanh.f32 %v598_v18 }
 0xcdd   :  { %v927_v19 = vpop.eup %926 }
 0xcde   :  { %v600_v20 = vmul.f32 %v927_v19, %v923_v11 }
 0xce0   :  { %v605_v21 = vpack.c.bf16 %v600_v20, %v600_v20 }
 0xce2   :  { %607 = vrot.lane.b32.xlu1 %v605_v21, %s939_s6 }
 0xd54   :  { %v608_v22 = vpop.permute.xlu1 %607 }
 0xd55   :  { %811 = vmatmul.mubr.msk.bf16.vlgmr.msra.gmra.mxu1 %vm69_vm0, %v608_v22 }
 0xe15   :  { %v646_v26 = vpop.f32.mrf.mxu1 }
 0xe16   :  { %v653_v27 = vadd.f32 %v646_v26, %v603_v24 }
 0xe17   :  { %v648_v28 = vpop.f32.mrf.mxu1 }
 0xe18   :  { %v812_v29 = vmul.f32 -1.442695, %v653_v27  ;;  %v654_v30 = vadd.f32 %v648_v28, %v604_v25 }
 0xe19   :  { %v650_v31 = vpop.f32.mrf.mxu1 }
 0xe1a   :  { %v813_v32 = vmul.f32 -1.442695, %v654_v30  ;;  %928 = vpow2.f32 %v812_v29 }
 0xe1b   :  { %v651_v33 = vpop.f32.mrf.mxu1 }
 0xe1c   :  { %930 = vpow2.f32 %v813_v32 }
 0xe27   :  { %v929_v34 = vpop.eup %928 }
 0xe28   :  { %v661_v1 = vadd.f32 1.0, %v929_v34 }
 0xe29   :  { %v931_v2 = vpop.eup %930 }
 0xe2a   :  { %v662_v35 = vadd.f32 1.0, %v931_v2 }
 0xe2c   :  { %932 = vrcp.f32 %v662_v35 }
 0xe2d   :  { %934 = vrcp.f32 %v661_v1 }
 0xe39   :  { %v933_v36 = vpop.eup %932 }
 0xe3a   :  { %v667_v3 = vmul.f32 2.0, %v933_v36  ;;  %v935_v4 = vpop.eup %934 }
 0xe3b   :  { %v669_v40 = vmul.f32 %v935_v4, %v598_v18 }
 0xe3c   :  { %v814_v37 = vadd.f32 -1.0, %v667_v3 }
 0xe3e   :  { %v670_v38 = vmul.f32 %v935_v4, %v814_v37 }
 0xe40   :  { %672 = vrot.lane.b32.xlu0 %v670_v38, %s939_s6 }
 0xeb2   :  { %v673_v41 = vpop.permute.xlu0 %672 }
 0xeb3   :  { %v675_v42 = vadd.f32 %v673_v41, %v669_v40 }
 0xeb5   :  { %936 = vtanh.f32 %v675_v42 }
 0xec2   :  { %v937_v43 = vpop.eup %936 }
 0xec3   :  { %v677_v44 = vmul.f32 %v937_v43, %v933_v36 }
 0xec5   :  { %v678_v45 = vpack.c.bf16 %v677_v44, %v677_v44 }
 0xec7   :  { %695 = vrot.lane.b32.xlu1 %v678_v45, %s939_s6 }
 0xf39   :  { %v696_v46 = vpop.permute.xlu1 %695 }
 0xf3a   :  { %835 = vmatmul.mubr.msk.bf16.vlgmr.msra.gmra.mxu0 %vm69_vm0, %v696_v46 }
 0xffa   :  { %v758_v48 = vpop.f32.mrf.mxu0 }
 0xffb   :  { %v759_v0 = vadd.f32 %v815_v47, %v758_v48 }
 0xffc   :  { %v836_v49 = vpop.f32.mrf.mxu0 }
 0xffd   :  { %764 = vst [vmem:[%s1150_s4] sm:$0xff] %v759_v0 }
 0xffe   :  { %v761_v50 = vpop.f32.mrf.mxu0 }
0x1000   :  { %v837_v51 = vpop.f32.mrf.mxu0 }

</bundles_post_ra>
